<compile_context>
chip_gen: v7x
topology: tpu7x:2x2x1
jax: 0.10.0
libtpu: 0.0.40
codegen_flags: <defaults>
</compile_context>

<pallas_src>
import jax
import jax.numpy as jnp
from jax.experimental import pallas as pl
from jax.experimental import pallas as _pl_unused  # keep namespace explicit
from jax.experimental.pallas import tpu as pltpu

# ---------------- small synthetic shapes ----------------
B = 4                        # batch of utterances
T = 8                        # video frames
H = W = 16                   # raw spatial size
CROP = 8                     # center-crop size (stand-in for the 88x88 crop)
C_AUD = 2                    # stereo waveform channels
SAMPLES_PER_FRAME = 640      # 16 kHz audio @ 25 fps -> rate_ratio == 640
L = T * SAMPLES_PER_FRAME    # audio samples per utterance
D = 128                      # model hidden dim
V = 128                      # "vocab" size

VID_K = 3 * CROP * CROP                  # 192 lane-dense raw-pixel features / frame
K_FUSED = SAMPLES_PER_FRAME + VID_K      # 832: [audio | video] fused contraction dim

_GRAY_R, _GRAY_G, _GRAY_B = 0.2989, 0.587, 0.114
_VID_MEAN, _VID_STD = 0.421, 0.165


# ---------------- single fused Pallas kernel (one grid step per utterance) ----
def fused_pipeline_kernel(vid_ref, wav_ref, wf_ref, bf_ref, wc_ref, bc_ref,
                          tok_ref):
    # ---- audio transform: sum-downmix + global layer_norm --------------------
    # wav_ref: (1, C, T, SPF).  Sum-downmix (no 1/C pass); exact equivalence to
    # mean-downmix + layer_norm(eps=1e-5) is kept via eps_eff = eps * C^2:
    #   (x/C - mu/C) / sqrt(var/C^2 + eps) == (x - mu) / sqrt(var + eps*C^2)
    wav = wav_ref[0]                                   # (C, T, SPF) f32
    n_chan = wav.shape[0]
    mono = jnp.sum(wav, axis=0)                        # (T, SPF) sum-downmix
    n = float(mono.shape[0] * mono.shape[1])
    s1 = jnp.sum(mono, axis=(0, 1), keepdims=True)     # single data pass:
    s2 = jnp.sum(mono * mono, axis=(0, 1), keepdims=True)
    mu = s1 * (1.0 / n)
    var = s2 * (1.0 / n) - mu * mu
    eps_eff = 1e-5 * float(n_chan * n_chan)
    a_in = (mono - mu) * jax.lax.rsqrt(var + eps_eff)  # (T, SPF)

    # ---- video: raw cropped pixels; /255, grayscale and Normalize are folded
    # into wf_ref rows (see init_params), so nothing to do here.
    vid = vid_ref[0]                                   # (T, 3*CROP*CROP) f32

    # ---- fused frontends + AV fusion + classifier: one MXU chain -------------
    # x = [a_in | vid]: audio first so the concat offset (640) is lane-aligned.
    x = jnp.concatenate([a_in, vid], axis=-1)          # (T, K_FUSED) f32
    feat = (jnp.dot(x.astype(jnp.bfloat16), wf_ref[...],
                    preferred_element_type=jnp.float32)
            + bf_ref[...])                             # (T, D) f32
    logits = (jnp.dot(feat.astype(jnp.bfloat16), wc_ref[...],
                      preferred_element_type=jnp.float32)
              + bc_ref[...])                           # (T, V) f32

    # ---- in-kernel argmax -> token ids (stand-in for the decoded transcript) -
    row_max = jnp.max(logits, axis=-1, keepdims=True)                 # (T, 1)
    ids = jax.lax.broadcasted_iota(jnp.int32, logits.shape, 1)        # (T, V)
    tok = jnp.min(jnp.where(logits >= row_max, ids, logits.shape[-1]),
                  axis=-1, keepdims=True)                             # (T, 1)
    tok_ref[0] = tok


# ---------------- wrapper: layout glue + one batched pallas_call ---------------
def inference_pipeline(video_bthwc, waveform, params):
    batch = video_bthwc.shape[0]

    # center crop (stand-in for the landmark-based face crop).  Raw (h, w, c)
    # pixel order is kept and flattened lane-dense; the permute/div/normalize
    # of the reference path live inside params["w_fused"] / params["b_fused"].
    off = (H - CROP) // 2
    vid = video_bthwc[:, :, off:off + CROP, off:off + CROP, :].astype(jnp.float32)
    vid = vid.reshape(batch, T, VID_K)                                # (B, T, 192)

    # audio: (B, C, L) -> (B, C, T, 640); identical element order, no relayout.
    wav = waveform.astype(jnp.float32).reshape(
        batch, waveform.shape[1], T, SAMPLES_PER_FRAME)

    rate_ratio = L // T
    assert 530 < rate_ratio < 670, "The video frame rate should be between 24 and 30 fps."
    # rate_ratio == 640 here -> the cut_or_pad branch of the reference is a no-op.
    # TODO(synk): cut_or_pad for non-640 rate ratios is not implemented.

    tokens = pl.pallas_call(
        fused_pipeline_kernel,
        out_shape=jax.ShapeDtypeStruct((batch, T, 1), jnp.int32),
        grid_spec=pltpu.PrefetchScalarGridSpec(
            num_scalar_prefetch=0,
            grid=(batch,),
            in_specs=[
                # per-utterance blocks, pipelined over the batch grid
                pl.BlockSpec((1, T, VID_K), lambda b: (b, 0, 0)),
                pl.BlockSpec((1, C_AUD, T, SAMPLES_PER_FRAME),
                             lambda b: (b, 0, 0, 0)),
                # weights/biases: index_map ignores b -> DMA'd once, VMEM-resident
                pl.BlockSpec((K_FUSED, D), lambda b: (0, 0)),
                pl.BlockSpec((1, D), lambda b: (0, 0)),
                pl.BlockSpec((D, V), lambda b: (0, 0)),
                pl.BlockSpec((1, V), lambda b: (0, 0)),
            ],
            out_specs=pl.BlockSpec((1, T, 1), lambda b: (b, 0, 0)),
        ),
        compiler_params=pltpu.CompilerParams(
            dimension_semantics=("parallel",)),   # shards batch across v7x TCs
    )(vid, wav,
      params["w_fused"], params["b_fused"], params["wc"], params["bc"])

    return tokens[:, :, 0]                                            # (B, T)


def init_params(key):
    """All constant folding is done here, once, outside the jitted call."""
    k1, k2, k3 = jax.random.split(key, 3)
    wv = 0.02 * jax.random.normal(k1, (CROP * CROP, D), jnp.float32)
    bv = jnp.zeros((D,), jnp.float32)
    wa = 0.02 * jax.random.normal(k2, (SAMPLES_PER_FRAME, D), jnp.float32)
    ba = jnp.zeros((D,), jnp.float32)
    wc = 0.02 * jax.random.normal(k3, (D, V), jnp.float32)
    bc = jnp.zeros((V,), jnp.float32)

    # Fold /255 -> grayscale -> Normalize(mean, std) into the video weights:
    #   v_feat = sum_{k,c} pixel[k,c] * (gray_c / (255*std)) * wv[k]
    #            - (mean/std) * sum_k wv[k] + bv
    gray = jnp.array([_GRAY_R, _GRAY_G, _GRAY_B], jnp.float32) / (255.0 * _VID_STD)
    w_v_eff = (wv[:, None, :] * gray[None, :, None]).reshape(VID_K, D)
    bv_eff = bv - (_VID_MEAN / _VID_STD) * jnp.sum(wv, axis=0)

    # Merge the two frontend matmuls (audio rows first -> lane-aligned concat)
    # and the AV-fusion bias add into one fused weight / bias.
    w_fused = jnp.concatenate([wa, w_v_eff], axis=0)                  # (832, D)
    b_fused = (bv_eff + ba).reshape(1, D)

    return {
        "w_fused": w_fused.astype(jnp.bfloat16),    # bf16 halves weight DMA
        "b_fused": b_fused,                         # f32
        "wc": wc.astype(jnp.bfloat16),
        "bc": bc.reshape(1, V),                     # f32
    }


if __name__ == "__main__":
    key = jax.random.PRNGKey(0)
    k_vid, k_aud, k_par = jax.random.split(key, 3)

    # synthetic "decoded video" (uint8-range pixel values, THWC like
    # torchvision.io.read_video) and stereo waveforms (like torchaudio.load)
    video = jax.random.randint(k_vid, (B, T, H, W, 3), 0, 256,
                               dtype=jnp.int32).astype(jnp.float32)
    waveform = jax.random.normal(k_aud, (B, C_AUD, L), dtype=jnp.float32)

    params = init_params(k_par)

    transcript = jax.jit(inference_pipeline)(video, waveform, params)
    jax.block_until_ready(transcript)
    print("KERNEL_OK")
</pallas_src>

<mosaic_0001>
module attributes {stable_mosaic.version = 11 : i64} {
  func.func @fused_pipeline_kernel(%arg0: i32, %arg1: memref<1x8x192xf32, #tpu.memory_space<vmem>>, %arg2: memref<1x2x8x640xf32, #tpu.memory_space<vmem>>, %arg3: memref<832x128xbf16, #tpu.memory_space<vmem>>, %arg4: memref<1x128xf32, #tpu.memory_space<vmem>>, %arg5: memref<128x128xbf16, #tpu.memory_space<vmem>>, %arg6: memref<1x128xf32, #tpu.memory_space<vmem>>, %arg7: memref<1x8x1xi32, #tpu.memory_space<vmem>>) attributes {dimension_semantics = [#tpu.dimension_semantics<parallel>], iteration_bounds = array<i64: 4>, scalar_prefetch = 0 : i64, scratch_operands = 0 : i64, tpu.core_type = #tpu.core_type<tc>, window_params = [{transform_indices = @transform_0, window_bounds = array<i64: 1, 8, 192>}, {transform_indices = @transform_1, window_bounds = array<i64: 1, 2, 8, 640>}, {pipeline_mode = #tpu.pipeline_mode<synchronous>, transform_indices = @transform_2, window_bounds = array<i64: 832, 128>}, {pipeline_mode = #tpu.pipeline_mode<synchronous>, transform_indices = @transform_3, window_bounds = array<i64: 1, 128>}, {pipeline_mode = #tpu.pipeline_mode<synchronous>, transform_indices = @transform_4, window_bounds = array<i64: 128, 128>}, {pipeline_mode = #tpu.pipeline_mode<synchronous>, transform_indices = @transform_5, window_bounds = array<i64: 1, 128>}, {transform_indices = @transform_6, window_bounds = array<i64: 1, 8, 1>}]} {
    %c0 = arith.constant 0 : index
    %c0_0 = arith.constant 0 : index
    %c0_1 = arith.constant 0 : index
    %c0_2 = arith.constant 0 : index
    %0 = vector.load %arg2[%c0, %c0_0, %c0_1, %c0_2] : memref<1x2x8x640xf32, #tpu.memory_space<vmem>>, vector<1x2x8x640xf32>
    %1 = vector.shape_cast %0 : vector<1x2x8x640xf32> to vector<2x8x640xf32>
    %cst = arith.constant dense<0.000000e+00> : vector<8x640xf32>
    %2 = vector.multi_reduction <add>, %1, %cst [0] : vector<2x8x640xf32> to vector<8x640xf32>
    %3 = vector.shape_cast %2 : vector<8x640xf32> to vector<1x8x640xf32>
    %cst_3 = arith.constant dense<0.000000e+00> : vector<1xf32>
    %4 = vector.multi_reduction <add>, %3, %cst_3 [1, 2] : vector<1x8x640xf32> to vector<1xf32>
    %5 = vector.shape_cast %4 : vector<1xf32> to vector<1x1x1xf32>
    %6 = vector.extract %5[0, 0, 0] : f32 from vector<1x1x1xf32>
    %7 = vector.broadcast %6 : f32 to vector<1x1xf32>
    %8 = arith.mulf %2, %2 : vector<8x640xf32>
    %9 = vector.shape_cast %8 : vector<8x640xf32> to vector<1x8x640xf32>
    %cst_4 = arith.constant dense<0.000000e+00> : vector<1xf32>
    %10 = vector.multi_reduction <add>, %9, %cst_4 [1, 2] : vector<1x8x640xf32> to vector<1xf32>
    %11 = vector.shape_cast %10 : vector<1xf32> to vector<1x1x1xf32>
    %12 = vector.extract %11[0, 0, 0] : f32 from vector<1x1x1xf32>
    %13 = vector.broadcast %12 : f32 to vector<1x1xf32>
    %cst_5 = arith.constant 1.95312503E-4 : f32
    %14 = vector.broadcast %cst_5 : f32 to vector<1x1xf32>
    %15 = arith.mulf %7, %14 : vector<1x1xf32>
    %cst_6 = arith.constant 1.95312503E-4 : f32
    %16 = vector.broadcast %cst_6 : f32 to vector<1x1xf32>
    %17 = arith.mulf %13, %16 : vector<1x1xf32>
    %18 = arith.mulf %15, %15 : vector<1x1xf32>
    %19 = arith.subf %17, %18 : vector<1x1xf32>
    %20 = vector.broadcast %15 : vector<1x1xf32> to vector<8x640xf32>
    %21 = arith.subf %2, %20 : vector<8x640xf32>
    %cst_7 = arith.constant 4.000000e-05 : f32
    %22 = vector.broadcast %cst_7 : f32 to vector<1x1xf32>
    %23 = arith.addf %19, %22 : vector<1x1xf32>
    %24 = math.rsqrt %23 : vector<1x1xf32>
    %25 = vector.broadcast %24 : vector<1x1xf32> to vector<8x640xf32>
    %26 = arith.mulf %21, %25 : vector<8x640xf32>
    %c0_8 = arith.constant 0 : index
    %c0_9 = arith.constant 0 : index
    %c0_10 = arith.constant 0 : index
    %27 = vector.load %arg1[%c0_8, %c0_9, %c0_10] : memref<1x8x192xf32, #tpu.memory_space<vmem>>, vector<1x8x192xf32>
    %28 = vector.shape_cast %27 : vector<1x8x192xf32> to vector<8x192xf32>
    %29 = tpu.concatenate %26, %28 in 1 : vector<8x640xf32>, vector<8x192xf32> -> vector<8x832xf32>
    %30 = arith.truncf %29 : vector<8x832xf32> to vector<8x832xbf16>
    %c0_11 = arith.constant 0 : index
    %c0_12 = arith.constant 0 : index
    %31 = vector.load %arg3[%c0_11, %c0_12] : memref<832x128xbf16, #tpu.memory_space<vmem>>, vector<832x128xbf16>
    %cst_13 = arith.constant dense<0.000000e+00> : vector<8x128xf32>
    %32 = tpu.matmul %30, %31, %cst_13 {dimension_numbers = #tpu.dot_dimension_numbers<[1], [0], [0], [1], [0, 0, 1, 1], [], []>} : vector<8x832xbf16>, vector<832x128xbf16>, vector<8x128xf32> -> vector<8x128xf32>
    %c0_14 = arith.constant 0 : index
    %c0_15 = arith.constant 0 : index
    %33 = vector.load %arg4[%c0_14, %c0_15] : memref<1x128xf32, #tpu.memory_space<vmem>>, vector<1x128xf32>
    %34 = vector.broadcast %33 : vector<1x128xf32> to vector<8x128xf32>
    %35 = arith.addf %32, %34 : vector<8x128xf32>
    %36 = arith.truncf %35 : vector<8x128xf32> to vector<8x128xbf16>
    %c0_16 = arith.constant 0 : index
    %c0_17 = arith.constant 0 : index
    %37 = vector.load %arg5[%c0_16, %c0_17] : memref<128x128xbf16, #tpu.memory_space<vmem>>, vector<128x128xbf16>
    %cst_18 = arith.constant dense<0.000000e+00> : vector<8x128xf32>
    %38 = tpu.matmul %36, %37, %cst_18 {dimension_numbers = #tpu.dot_dimension_numbers<[1], [0], [0], [1], [0, 0, 1, 1], [], []>} : vector<8x128xbf16>, vector<128x128xbf16>, vector<8x128xf32> -> vector<8x128xf32>
    %c0_19 = arith.constant 0 : index
    %c0_20 = arith.constant 0 : index
    %39 = vector.load %arg6[%c0_19, %c0_20] : memref<1x128xf32, #tpu.memory_space<vmem>>, vector<1x128xf32>
    %40 = vector.broadcast %39 : vector<1x128xf32> to vector<8x128xf32>
    %41 = arith.addf %38, %40 : vector<8x128xf32>
    %cst_21 = arith.constant dense<0xFF800000> : vector<8xf32>
    %42 = vector.multi_reduction <maximumf>, %41, %cst_21 [1] : vector<8x128xf32> to vector<8xf32>
    %43 = vector.shape_cast %42 : vector<8xf32> to vector<8x1xf32>
    %44 = tpu.iota {dimensions = array<i32: 1>} : vector<8x128xi32>
    %45 = vector.broadcast %43 : vector<8x1xf32> to vector<8x128xf32>
    %46 = arith.cmpf oge, %41, %45 : vector<8x128xf32>
    %c128_i32 = arith.constant 128 : i32
    %47 = vector.broadcast %c128_i32 : i32 to vector<8x128xi32>
    %48 = arith.select %46, %44, %47 : vector<8x128xi1>, vector<8x128xi32>
    %cst_22 = arith.constant dense<2147483647> : vector<8xi32>
    %49 = vector.multi_reduction <minsi>, %48, %cst_22 [1] : vector<8x128xi32> to vector<8xi32>
    %50 = vector.shape_cast %49 : vector<8xi32> to vector<8x1xi32>
    %c0_23 = arith.constant 0 : index
    %c0_24 = arith.constant 0 : index
    %c0_25 = arith.constant 0 : index
    %51 = vector.load %arg7[%c0_23, %c0_24, %c0_25] : memref<1x8x1xi32, #tpu.memory_space<vmem>>, vector<1x8x1xi32>
    %52 = vector.shape_cast %51 : vector<1x8x1xi32> to vector<8x1xi32>
    %53 = vector.shape_cast %50 : vector<8x1xi32> to vector<1x8x1xi32>
    tpu.vector_store %arg7[%c0_23, %c0_24, %c0_25], %53 {strides = array<i32>} : memref<1x8x1xi32, #tpu.memory_space<vmem>>, vector<1x8x1xi32>,
    return
  }
  func.func @transform_0(%arg0: i32) -> (i32, i32, i32) {
    %c0_i32 = arith.constant 0 : i32
    %c0_i32_0 = arith.constant 0 : i32
    %c0_i32_1 = arith.constant 0 : i32
    return %arg0, %c0_i32, %c0_i32_0 : i32, i32, i32
  }
  func.func @transform_1(%arg0: i32) -> (i32, i32, i32, i32) {
    %c0_i32 = arith.constant 0 : i32
    %c0_i32_0 = arith.constant 0 : i32
    %c0_i32_1 = arith.constant 0 : i32
    %c0_i32_2 = arith.constant 0 : i32
    return %arg0, %c0_i32, %c0_i32_0, %c0_i32_1 : i32, i32, i32, i32
  }
  func.func @transform_2(%arg0: i32) -> (i32, i32) {
    %c0_i32 = arith.constant 0 : i32
    %c0_i32_0 = arith.constant 0 : i32
    %c0_i32_1 = arith.constant 0 : i32
    return %c0_i32, %c0_i32_0 : i32, i32
  }
  func.func @transform_3(%arg0: i32) -> (i32, i32) {
    %c0_i32 = arith.constant 0 : i32
    %c0_i32_0 = arith.constant 0 : i32
    %c0_i32_1 = arith.constant 0 : i32
    return %c0_i32, %c0_i32_0 : i32, i32
  }
  func.func @transform_4(%arg0: i32) -> (i32, i32) {
    %c0_i32 = arith.constant 0 : i32
    %c0_i32_0 = arith.constant 0 : i32
    %c0_i32_1 = arith.constant 0 : i32
    return %c0_i32, %c0_i32_0 : i32, i32
  }
  func.func @transform_5(%arg0: i32) -> (i32, i32) {
    %c0_i32 = arith.constant 0 : i32
    %c0_i32_0 = arith.constant 0 : i32
    %c0_i32_1 = arith.constant 0 : i32
    return %c0_i32, %c0_i32_0 : i32, i32
  }
  func.func @transform_6(%arg0: i32) -> (i32, i32, i32) {
    %c0_i32 = arith.constant 0 : i32
    %c0_i32_0 = arith.constant 0 : i32
    %c0_i32_1 = arith.constant 0 : i32
    return %arg0, %c0_i32, %c0_i32_0 : i32, i32, i32
  }
}

</mosaic_0001>

<bundles_post_ra>
// kernel: inference_pipeline.1
= control target key start
LH: loop header
LB: loop body
LE: loop exit
PB: predicated region body
PF: predicated region fallthrough
CT: control target
= control target key end

     0   :  { %s1439_s21 = smov 0   ;;  %s1716_s0 = inlined_call_operand.vmem [shape: f32[4,8,192], index: 0, kind: input, shape index: {}]   ;;  %s1717_s1 = inlined_call_operand.vmem [shape: f32[4,2,8,640], index: 1, kind: input, shape index: {}]   ;;  %s1718_s2 = inlined_call_operand.vmem [shape: bf16[832,128], index: 2, kind: input, shape index: {}]   ;;  %s1719_s3 = inlined_call_operand.vmem [shape: f32[1,128], index: 3, kind: input, shape index: {}]   ;;  %s1720_s4 = inlined_call_operand.vmem [shape: bf16[128,128], index: 4, kind: input, shape index: {}]   ;;  %s1721_s5 = inlined_call_operand.vmem [shape: f32[1,128], index: 5, kind: input, shape index: {}]   ;;  %s1722_s6 = inlined_call_operand.vmem [shape: s32[4,8,1], index: 6, kind: output, shape index: {}]  }
   0x1 LB: > { %s1130_s22 = sadd.s32 4294967295, %s1400_s21   ;;  %p1134_p0 = scmp.ge.s32.totalorder %s1400_s21, 1  ;;  %s1400_s21 = sphi %s1439_s21, %s16_s21  }
   0x2   : > { %p222_p1 = scmp.lt.s32.totalorder %s1400_s21, 5 }
   0x4   : > { %p223_p2 = pnand %p1134_p0, %p222_p1 }
   0x5   : > { %p256_p3 = scmp.lt.s32.totalorder (!%p223_p2), %s1130_s22, 3  ;;  %v1332_v28 = vld [vmem:[%s1718_s2 + $0x40] sm:$0xff] (!%p223_p2)   ;;  %v1336_v32 = vld [vmem:[%s1718_s2 + $0x48] sm:$0xff] (!%p223_p2)   ;;  %v1340_v36 = vld [vmem:[%s1718_s2 + $0x50] sm:$0xff] (!%p223_p2)   ;;  %v1402_v61 = vmov (!%p223_p2), 0.0   ;;  %vm1403_vm0 = vmmov (!%p223_p2), 0  }
   0x6   : > { %226 = sbr.rel (%p223_p2) target bundleno = 1167 (0x48f), region = 44  ;;  %v1333_v29 = vld [vmem:[%s1718_s2] sm:$0xff] (!%p223_p2)   ;;  %1205 = vmatprep.subr.bf16.mxu0 (!%p223_p2), %v1332_v28  ;;  %v1337_v33 = vld [vmem:[%s1718_s2 + $0x8] sm:$0xff] (!%p223_p2)   ;;  %v1341_v37 = vld [vmem:[%s1718_s2 + $0x10] sm:$0xff] (!%p223_p2)   ;;  %vm767_vm1 = vcmask (!%p223_p2), 523264   ;;  %vm1063_vm4 = vcmask (!%p223_p2), 7168  }
   0x7   : > { %v1334_v30 = vld [vmem:[%s1718_s2 + $0xc0] sm:$0xff] (!%p223_p2)   ;;  %1206 = vmatpush3.bf16.msra.mxu0 (!%p223_p2), %v1333_v29  ;;  %v1338_v34 = vld [vmem:[%s1718_s2 + $0xc8] sm:$0xff] (!%p223_p2)   ;;  %v1342_v38 = vld [vmem:[%s1718_s2 + $0xd0] sm:$0xff] (!%p223_p2)  }
   0x8   : > { %v1335_v31 = vld [vmem:[%s1718_s2 + $0x80] sm:$0xff] (!%p223_p2)   ;;  %1227 = vmatprep.subr.bf16.mxu1 (!%p223_p2), %v1334_v30  ;;  %1207 = vmatprep.subr.bf16.mxu0 (!%p223_p2), %v1336_v32  ;;  %v1339_v35 = vld [vmem:[%s1718_s2 + $0x88] sm:$0xff] (!%p223_p2)   ;;  %v1343_v39 = vld [vmem:[%s1718_s2 + $0x90] sm:$0xff] (!%p223_p2)  }
   0x9   : > { %1228 = vmatpush3.bf16.msra.mxu1 (!%p223_p2), %v1335_v31  ;;  %v1344_v40 = vld [vmem:[%s1718_s2 + $0x58] sm:$0xff] (!%p223_p2)   ;;  %v1348_v44 = vld [vmem:[%s1718_s2 + $0x60] sm:$0xff] (!%p223_p2)   ;;  %v1352_v48 = vld [vmem:[%s1718_s2 + $0x68] sm:$0xff] (!%p223_p2)  }
   0xa   : > { %1229 = vmatprep.subr.bf16.mxu1 (!%p223_p2), %v1338_v34  ;;  %v1345_v41 = vld [vmem:[%s1718_s2 + $0x18] sm:$0xff] (!%p223_p2)   ;;  %v1349_v45 = vld [vmem:[%s1718_s2 + $0x20] sm:$0xff] (!%p223_p2)   ;;  %v1353_v49 = vld [vmem:[%s1718_s2 + $0x28] sm:$0xff] (!%p223_p2)  }
   0xb   : > { %1208 = vmatpush3.bf16.msra.mxu0 (!%p223_p2), %v1337_v33  ;;  %v1346_v42 = vld [vmem:[%s1718_s2 + $0xd8] sm:$0xff] (!%p223_p2)   ;;  %v1350_v46 = vld [vmem:[%s1718_s2 + $0xe0] sm:$0xff] (!%p223_p2)   ;;  %v1354_v50 = vld [vmem:[%s1718_s2 + $0xe8] sm:$0xff] (!%p223_p2)  }
   0xc   : > { %1209 = vmatprep.subr.bf16.mxu0 (!%p223_p2), %v1340_v36  ;;  %v1347_v43 = vld [vmem:[%s1718_s2 + $0x98] sm:$0xff] (!%p223_p2)   ;;  %v1351_v47 = vld [vmem:[%s1718_s2 + $0xa0] sm:$0xff] (!%p223_p2)   ;;  %v1355_v51 = vld [vmem:[%s1718_s2 + $0xa8] sm:$0xff] (!%p223_p2)  }
   0xd   : > { %s1724_s22 = smov (!%p256_p3, %s1130_s22), 3  ;;  %1230 = vmatpush3.bf16.msra.mxu1 %v1339_v35  ;;  %v1356_v52 = vld [vmem:[%s1718_s2 + $0x70] sm:$0xff]   ;;  %v1360_v56 = vld [vmem:[%s1718_s2 + $0x78] sm:$0xff]   ;;  %v1364_v60 = vld [vmem:[%s1718_s2 + $0x140] sm:$0xff]  }
   0xe   : > { %s1317_s23 = smul.u32 80, %s1724_s22  ;;  %1231 = vmatprep.subr.bf16.mxu1 %v1342_v38  ;;  %v1358_v53 = vld [vmem:[%s1718_s2 + $0xf0] sm:$0xff]   ;;  %v1362_v57 = vld [vmem:[%s1718_s2 + $0xf8] sm:$0xff]   ;;  %s1204_s29 = sshll.u32 %s1724_s22, 4  ;;  %v1365_v34 = vld [vmem:[%s1718_s2 + $0x100] sm:$0xff]  }
   0xf   : > { %1210 = vmatpush3.bf16.msra.mxu0 %v1341_v37  ;;  %v1357_v54 = vld [vmem:[%s1718_s2 + $0x30] sm:$0xff]   ;;  %v1361_v58 = vld [vmem:[%s1718_s2 + $0x38] sm:$0xff]   ;;  %s1594_s8 = scalar_lea.vmem %s1716_s0, %s1204_s29  ;;  %v1374_v35 = vld [vmem:[%s1718_s2 + $0x180] sm:$0xff]   ;;  %s1138_s25 = sshll.u32 %s1724_s22, 3 }
  0x10   : > { %s265_s26 = scalar_lea.vmem %s1717_s1, %s1317_s23  ;;  %1211 = vmatprep.subr.bf16.mxu0 %v1344_v40  ;;  %v1359_v55 = vld [vmem:[%s1718_s2 + $0xb0] sm:$0xff]   ;;  %v1363_v59 = vld [vmem:[%s1718_s2 + $0xb8] sm:$0xff]   ;;  %v1366_v36 = vld [vmem:[%s1718_s2 + $0x148] sm:$0xff]  }
  0x11   : > { %v271_v0 = vld [vmem:[%s265_s26] sm:$0xff]  ;;  %v272_v1 = vld [vmem:[%s265_s26 + $0x8] sm:$0xff]  ;;  %v273_v2 = vld [vmem:[%s265_s26 + $0x10] sm:$0xff]  ;;  %1232 = vmatpush3.bf16.msra.mxu1 %v1343_v39 }
  0x12   : > { %v274_v3 = vld [vmem:[%s265_s26 + $0x18] sm:$0xff]  ;;  %v276_v4 = vld [vmem:[%s265_s26 + $0x28] sm:$0xff]  ;;  %v275_v5 = vld [vmem:[%s265_s26 + $0x20] sm:$0xff]  ;;  %1233 = vmatprep.subr.bf16.mxu1 %v1346_v42 }
  0x13   : > { %v277_v6 = vld [vmem:[%s265_s26 + $0x30] sm:$0xff]  ;;  %v278_v7 = vld [vmem:[%s265_s26 + $0x38] sm:$0xff]  ;;  %v279_v8 = vld [vmem:[%s265_s26 + $0x40] sm:$0xff]  ;;  %v1453_v9 = vadd.f32 %v276_v4, %v271_v0  ;;  %1212 = vmatpush3.bf16.msra.mxu0 %v1345_v41 }
  0x14   : > { %v280_v10 = vld [vmem:[%s265_s26 + $0x48] sm:$0xff]  ;;  %v1455_v11 = vadd.f32 %v277_v6, %v272_v1  ;;  %v1457_v12 = vadd.f32 %v278_v7, %v273_v2  ;;  %v1461_v14 = vadd.f32 %v279_v8, %v274_v3  ;;  %1213 = vmatprep.subr.bf16.mxu0 %v1348_v44  ;;  %v1368_v40 = vld [vmem:[%s1718_s2 + $0x150] sm:$0xff]   ;;  %v1371_v44 = vld [vmem:[%s1718_s2 + $0x118] sm:$0xff]  }
  0x15   : > { %v300_v13 = vmul.f32 %v1453_v9, %v1453_v9  ;;  %v1469_v18 = vadd.f32 %v280_v10, %v275_v5  ;;  %1234 = vmatpush3.bf16.msra.mxu1 %v1347_v43  ;;  %v1367_v38 = vld [vmem:[%s1718_s2 + $0x108] sm:$0xff]   ;;  %v1369_v41 = vld [vmem:[%s1718_s2 + $0x110] sm:$0xff]   ;;  %v1370_v43 = vld [vmem:[%s1718_s2 + $0x158] sm:$0xff]  }
  0x16   : > { %v286_v15 = vadd.f32 %v1455_v11, %v1453_v9  ;;  %v301_v16 = vmul.f32 %v1455_v11, %v1455_v11  ;;  %v302_v17 = vmul.f32 %v1457_v12, %v1457_v12  ;;  %v303_v20 = vmul.f32 %v1461_v14, %v1461_v14  ;;  %1235 = vmatprep.subr.bf16.mxu1 %v1350_v46  ;;  %v1377_v39 = vld [vmem:[%s1718_s2 + $0x188] sm:$0xff]   ;;  %v1380_v42 = vld [vmem:[%s1718_s2 + $0x190] sm:$0xff]   ;;  %v1383_v46 = vld [vmem:[%s1718_s2 + $0x198] sm:$0xff]  }
  0x17   : > { %v304_v23 = vmul.f32 %v1469_v18, %v1469_v18  ;;  %1214 = vmatpush3.bf16.msra.mxu0 %v1349_v45  ;;  %v336_v45 = vld [vmem:[%s1594_s8 + $0x8] sm:$0xff] }
  0x18   : > { %v287_v19 = vadd.f32 %v286_v15, %v1457_v12  ;;  %v305_v21 = vadd.f32 %v301_v16, %v300_v13  ;;  %1215 = vmatprep.subr.bf16.mxu0 %v1352_v48  ;;  %v343_v48 = vpack.c.bf16 %v336_v45, %v336_v45 }
  0x19   : > { %1236 = vmatpush3.bf16.msra.mxu1 %v1351_v47  ;;  %v1372_v47 = vld [vmem:[%s1718_s2 + $0x160] sm:$0xff]  }
  0x1a   : > { %v288_v22 = vadd.f32 %v287_v19, %v1461_v14  ;;  %v306_v24 = vadd.f32 %v305_v21, %v302_v17  ;;  %1237 = vmatprep.subr.bf16.mxu1 %v1354_v50  ;;  %v1375_v50 = vld [vmem:[%s1718_s2 + $0x168] sm:$0xff]  }
  0x1b   : > { %1216 = vmatpush3.bf16.msra.mxu0 %v1353_v49  ;;  %v1373_v49 = vld [vmem:[%s1718_s2 + $0x120] sm:$0xff]  }
  0x1c   : > { %v289_v25 = vadd.f32 %v288_v22, %v1469_v18  ;;  %v307_v26 = vadd.f32 %v306_v24, %v303_v20  ;;  %1217 = vmatprep.subr.bf16.mxu0 %v1356_v52  ;;  %v1378_v52 = vld [vmem:[%s1718_s2 + $0x170] sm:$0xff]  }
  0x1d   : > { %1238 = vmatpush3.bf16.msra.mxu1 %v1355_v51  ;;  %v1376_v51 = vld [vmem:[%s1718_s2 + $0x128] sm:$0xff]  }
  0x1e   : > { %290 = vadd.xlane.f32.xlu0 %v289_v25  ;;  %v308_v27 = vadd.f32 %v307_v26, %v304_v23  ;;  %1239 = vmatprep.subr.bf16.mxu1 %v1358_v53  ;;  %v1379_v53 = vld [vmem:[%s1718_s2 + $0x130] sm:$0xff]  }
  0x1f   : > { %1218 = vmatpush3.bf16.msra.mxu0 %v1357_v54  ;;  %v1381_v54 = vld [vmem:[%s1718_s2 + $0x178] sm:$0xff]  }
  0x20   : > { %1219 = vmatprep.subr.bf16.mxu0 %v1360_v56  ;;  %v1382_v56 = vld [vmem:[%s1718_s2 + $0x138] sm:$0xff]  }
  0x21   : > { %1240 = vmatpush3.bf16.msra.mxu1 %v1359_v55 }
  0x22   : > { %309 = vadd.xlane.f32.xlu0 %v308_v27  ;;  %1241 = vmatprep.subr.bf16.mxu1 %v1362_v57 }
  0x23   : > { %1220 = vmatpush3.bf16.msra.mxu0 %v1361_v58 }
  0x24   : > { %1249 = vmatprep.subr.bf16.mxu0 %v1364_v60  ;;  %v1386_v60 = vld [vmem:[%s1720_s4 + $0x10] sm:$0xff]  }
  0x25   : > { %1242 = vmatpush3.bf16.msra.mxu1 %v1363_v59  ;;  %v1384_v59 = vld [vmem:[%s1720_s4] sm:$0xff]  }
  0x26   : > { %1285 = vmatprep.subr.bf16.mxu1 %v1402_v61 }
  0xab   : > { %v291_v62 = vpop.xlane.xlu0 %290 }
  0xac   : > { %v292_v63 = vrot.slane %v291_v62, 4 }
  0xae   : > { %v293_v0 = vadd.f32 %v292_v63, %v291_v62  ;;  %v1387_v62 = vld [vmem:[%s1720_s4 + $0x18] sm:$0xff]   ;;  %v1388_v63 = vld [vmem:[%s1720_s4 + $0x20] sm:$0xff]  }
  0xaf   : > { %v310_v1 = vpop.xlane.xlu0 %309 }
  0xb0   : > { %v294_v2 = vrot.slane %v293_v0, 2  ;;  %v311_v3 = vrot.slane %v310_v1, 4 }
  0xb2   : > { %v312_v4 = vadd.f32 %v311_v3, %v310_v1  ;;  %v295_v5 = vadd.f32 %v294_v2, %v293_v0  ;;  %v1389_v0 = vld [vmem:[%s1720_s4 + $0x28] sm:$0xff]   ;;  %v1390_v1 = vld [vmem:[%s1720_s4 + $0x30] sm:$0xff]   ;;  %v1391_v2 = vld [vmem:[%s1720_s4 + $0x38] sm:$0xff]  }
  0xb4   : > { %v313_v6 = vrot.slane %v312_v4, 2  ;;  %v296_v7 = vrot.slane %v295_v5, 1 }
  0xb6   : > { %v297_v8 = vadd.f32 %v296_v7, %v295_v5  ;;  %v314_v10 = vadd.f32 %v313_v6, %v312_v4  ;;  %v1139_v5 = vld [vmem:[%s1719_s3] ss:$0 sm:$0xff] }
  0xb8   : > { %1318 = vpush %v297_v8  ;;  %v315_v13 = vrot.slane %v314_v10, 1 }
  0xba   : > { %v316_v15 = vadd.f32 %v315_v13, %v314_v10 }
  0xbc   : > { %1320 = vpush %v316_v15 }
  0xe9   : > { %s1319_s27 = spop %1318 }
  0xea   : > { %v299_v16 = vstv %s1319_s27 }
  0xeb   : > { %v1578_v17 = vmul.f32 0.0001953125, %v299_v16 }
  0xed   : > { %s1321_s28 = spop %1320  ;;  %v321_v21 = vmul.f32 %v1578_v17, %v1578_v17  ;;  %v324_v24 = vsub.f32 %v1455_v11, %v1578_v17  ;;  %v326_v25 = vsub.f32 %v1461_v14, %v1578_v17  ;;  %v323_v26 = vsub.f32 %v1453_v9, %v1578_v17  ;;  %v335_v9 = vld [vmem:[%s1594_s8] sm:$0xff] }
  0xee   : > { %v318_v19 = vstv %s1321_s28  ;;  %v325_v27 = vsub.f32 %v1457_v12, %v1578_v17  ;;  %v342_v37 = vpack.c.bf16 %v335_v9, %v335_v9  ;;  %v327_v55 = vsub.f32 %v1469_v18, %v1578_v17  ;;  %v1385_v18 = vld [vmem:[%s1720_s4 + $0x8] sm:$0xff]   ;;  %s269_s28 = scalar_lea.vmem %s1722_s6, %s1138_s25 }
  0xef   : > { %v320_v20 = vmul.f32 0.0001953125, %v318_v19 }
  0xf1   : > { %v322_v22 = vsub.f32 %v320_v20, %v321_v21 }
  0xf3   : > { %v328_v23 = vadd.f32 4e-05, %v322_v22 }
  0xf5   : > { %1392 = vrsqrt.f32 %v328_v23 }
  0xff   : > { %v1596_v28 = vpop.eup %1392 }
 0x100   : > { %v331_v29 = vmul.f32 %v1596_v28, %v324_v24  ;;  %v333_v11 = vmul.f32 %v1596_v28, %v326_v25  ;;  %v330_v14 = vmul.f32 %v1596_v28, %v323_v26  ;;  %v332_v30 = vmul.f32 %v1596_v28, %v325_v27 }
 0x101   : > { %v334_v57 = vmul.f32 %v1596_v28, %v327_v55 }
 0x102   : > { %v338_v31 = vpack.c.bf16 %v331_v29, %v331_v29  ;;  %v340_v32 = vpack.c.bf16 %v333_v11, %v333_v11  ;;  %v337_v12 = vpack.c.bf16 %v330_v14, %v330_v14  ;;  %v339_v33 = vpack.c.bf16 %v332_v30, %v332_v30  ;;  %v1193_v30 = vld [vmem:[%s1721_s5] ss:$0 sm:$0xff] }
 0x103   : > { %v341_v58 = vpack.c.bf16 %v334_v57, %v334_v57 }
 0x104   : > { %803 = vmatprep.mubr.bf16.mxu0 %v338_v31  ;;  %843 = vmatprep.mubr.bf16.mxu1 %v340_v32 }
 0x105   : > { %804 = vmatmul.mubr.bf16.vlgmr.msra.gmra.mrb[0].mxu0 %v337_v12  ;;  %844 = vmatmul.mubr.bf16.vlgmr.msra.gmra.mrb[0].mxu1 %v339_v33 }
 0x106   : > { %1250 = vmatpush3.bf16.msra.mxu0 %v1365_v34  ;;  %1286 = vmatpush3.bf16.msra.mxu1 %v1374_v35  ;;  %v1045_v34 = vlaneseq }
 0x107   : > { %1251 = vmatprep.subr.bf16.mxu0 %v1366_v36  ;;  %1287 = vmatprep.subr.bf16.mxu1 %v1402_v61 }
 0x108   : > { %883 = vmatprep.mubr.bf16.mxu0 %v342_v37  ;;  %1293 = vmatprep.mubr.msk.bf16.mxu1 %vm1403_vm0, %v1402_v61  ;;  %v1046_v35 = vand.u32 127, %v1045_v34 }
 0x10a   : > { %1252 = vmatpush3.bf16.msra.mxu0 %v1367_v38  ;;  %1288 = vmatpush3.bf16.msra.mxu1 %v1377_v39 }
 0x10b   : > { %1253 = vmatprep.subr.bf16.mxu0 %v1368_v40  ;;  %1289 = vmatprep.subr.bf16.mxu1 %v1402_v61 }
 0x10e   : > { %1254 = vmatpush3.bf16.msra.mxu0 %v1369_v41  ;;  %1290 = vmatpush3.bf16.msra.mxu1 %v1380_v42 }
 0x10f   : > { %1255 = vmatprep.subr.bf16.mxu0 %v1370_v43  ;;  %1291 = vmatprep.subr.bf16.mxu1 %v1402_v61 }
 0x112   : > { %1256 = vmatpush3.bf16.msra.mxu0 %v1371_v44  ;;  %1292 = vmatpush3.bf16.msra.mxu1 %v1383_v46 }
 0x113   : > { %1257 = vmatprep.subr.bf16.mxu0 %v1372_v47  ;;  %1297 = vmatprep.subr.bf16.mxu1 %v1402_v61 }
 0x115   : > { %1294 = vmatmul.mubr.msk.bf16.vlgmr.msra.gmra.mrb[4].mxu1 %vm767_vm1, %v343_v48 }
 0x116   : > { %1258 = vmatpush3.bf16.msra.mxu0 %v1373_v49  ;;  %1313 = vmatprep.mubr.msk.bf16.mxu1 %vm1403_vm0, %v1402_v61 }
 0x117   : > { %1259 = vmatprep.subr.bf16.mxu0 %v1375_v50  ;;  %1298 = vmatpush3.bf16.msra.mxu1 %v1384_v59 }
 0x118   : > { %1299 = vmatprep.subr.bf16.mxu1 %v1402_v61 }
 0x11a   : > { %1260 = vmatpush3.bf16.msra.mxu0 %v1376_v51 }
 0x11b   : > { %1261 = vmatprep.subr.bf16.mxu0 %v1378_v52  ;;  %1300 = vmatpush3.bf16.msra.mxu1 %v1385_v18 }
 0x11c   : > { %1301 = vmatprep.subr.bf16.mxu1 %v1402_v61 }
 0x11e   : > { %1262 = vmatpush3.bf16.msra.mxu0 %v1379_v53 }
 0x11f   : > { %1263 = vmatprep.subr.bf16.mxu0 %v1381_v54  ;;  %1302 = vmatpush3.bf16.msra.mxu1 %v1386_v60 }
 0x120   : > { %1303 = vmatprep.subr.bf16.mxu1 %v1402_v61 }
 0x122   : > { %1264 = vmatpush3.bf16.msra.mxu0 %v1382_v56 }
 0x123   : > { %1304 = vmatpush3.bf16.msra.mxu1 %v1387_v62 }
 0x124   : > { %1305 = vmatprep.subr.bf16.mxu1 %v1402_v61 }
 0x125   : > { %884 = vmatmul.mubr.bf16.vlgmr.msra.gmra.mrb[4].mxu0 %v341_v58 }
 0x127   : > { %1306 = vmatpush3.bf16.msra.mxu1 %v1388_v63 }
 0x128   : > { %1307 = vmatprep.subr.bf16.mxu1 %v1402_v61 }
 0x12b   : > { %1308 = vmatpush3.bf16.msra.mxu1 %v1389_v0 }
 0x12c   : > { %1309 = vmatprep.subr.bf16.mxu1 %v1402_v61 }
 0x12f   : > { %1310 = vmatpush3.bf16.msra.mxu1 %v1390_v1 }
 0x130   : > { %1311 = vmatprep.subr.bf16.mxu1 %v1402_v61 }
 0x133   : > { %1312 = vmatpush3.bf16.msra.mxu1 %v1391_v2 }
 0x1d8   : > { %v1221_v3 = vpop.f32.mrb[0].mxu0  ;;  %v1243_v4 = vpop.f32.mrb[0].mxu1 }
 0x1d9   : > { %v1222_v6 = vpop.f32.mrb[1].mxu0  ;;  %v1244_v7 = vpop.f32.mrb[1].mxu1 }
 0x1da   : > { %v1223_v8 = vadd.f32 %v1222_v6, %v1221_v3  ;;  %v1245_v10 = vadd.f32 %v1244_v7, %v1243_v4  ;;  %v1224_v13 = vpop.f32.mrb[2].mxu0  ;;  %v1246_v15 = vpop.f32.mrb[2].mxu1 }
 0x1db   : > { %v1225_v16 = vpop.f32.mrb[3].mxu0  ;;  %v1247_v17 = vpop.f32.mrb[3].mxu1 }
 0x1dc   : > { %v806_v61 = vadd.f32 %v1223_v8, %v1139_v5 }
 0x1de   : > { %v846_v19 = vadd.f32 %v1245_v10, %v806_v61 }
 0x1e8   : > { %v925_v20 = vpop.f32.mrb[4].mxu1 }
 0x1e9   : > { %v1295_v21 = vpop.f32.mrb[5].mxu1 }
 0x1ea   : > { %v928_v22 = vpop.f32.mrb[6].mxu1 }
 0x1eb   : > { %v1296_v23 = vpop.f32.mrb[7].mxu1 }
 0x1f8   : > { %v1265_v24 = vpop.f32.mrb[4].mxu0 }
 0x1f9   : > { %v1266_v25 = vpop.f32.mrb[5].mxu0 }
 0x1fa   : > { %v1267_v26 = vadd.f32 %v1266_v25, %v1265_v24  ;;  %v1268_v27 = vpop.f32.mrb[6].mxu0 }
 0x1fb   : > { %v1269_v28 = vpop.f32.mrb[7].mxu0 }
 0x1fc   : > { %v886_v29 = vadd.f32 %v1267_v26, %v846_v19 }
 0x1fe   : > { %v926_v11 = vadd.f32 %v925_v20, %v886_v29 }
 0x200   : > { %v931_v14 = vpack.c.bf16 %v926_v11, %v926_v11 }
 0x202   : > { %1314 = vmatmul.mubr.bf16.vlgmr.msra.gmra.mrb[8].mxu1 %v931_v14 }
 0x2d5   : > { %v1037_v9 = vpop.f32.mrb[8].mxu1 }
 0x2d6   : > { %v1038_v31 = vadd.f32 %v1193_v30, %v1037_v9  ;;  %v1315_v32 = vpop.f32.mrb[9].mxu1 }
 0x2d7   : > { %v1040_v12 = vpop.f32.mrb[10].mxu1 }
 0x2d8   : > { %1043 = vmax.xlane.f32.xlu1 %v1038_v31  ;;  %v1316_v33 = vpop.f32.mrb[11].mxu1 }
 0x365   : > { %v1044_v36 = vpop.xlane.xlu1 %1043 }
 0x366   : > { %vm1047_vm2 = vcmp.ge.f32.partialorder %v1038_v31, %v1044_v36 }
 0x367   : > { %v1048_v37 = vsel %vm1047_vm2, %v1046_v35, 128 }
 0x368   : > { %v1050_v38 = vshra.s32 %v1048_v37, 16  ;;  %v1049_v40 = vand.u32 65535, %v1048_v37 }
 0x36a   : > { %v1052_v39 = vcvt.s32.f32 %v1050_v38  ;;  %v1051_v42 = vcvt.s32.f32 %v1049_v40 }
 0x36c   : > { %1053 = vmin.xlane.f32.xlu1 %v1052_v39 }
 0x3f9   : > { %v1054_v41 = vpop.xlane.xlu1 %1053 }
 0x3fa   : > { %vm1055_vm3 = vcmp.eq.f32.partialorder %v1052_v39, %v1054_v41  ;;  %v1060_v44 = vcvt.f32.s32 %v1054_v41 }
 0x3fb   : > { %v1056_v43 = vsel %vm1055_vm3, %v1051_v42, inf }
 0x3fc   : > { %1057 = vmin.xlane.f32.xlu0 %v1056_v43  ;;  %v1061_v46 = vshll.u32 %v1060_v44, 16 }
 0x489   : > { %v1058_v45 = vpop.xlane.xlu0 %1057 }
 0x48a   : > { %v1059_v47 = vcvt.f32.s32 %v1058_v45 }
 0x48c   : > { %v1062_v48 = vadd.s32 %v1061_v46, %v1059_v47 }
 0x48e   : > { %1064 = vst.msk [vmem:[%s269_s28] sm:$0xff] %vm1063_vm4, %v1062_v48 }
 0x48f PF: > { %s16_s21 = sadd.s32 1, %s1400_s21  }
 0x490   : > { %p13_p4 = scmp.ge.s32.totalorder %s16_s21, 6  }
 0x492   :  { %15 = sbr.rel (!%p13_p4) target bundleno = 1 (0x1), region = 77 }

</bundles_post_ra>
